<compile_context>
chip_gen: v7x
topology: tpu7x:2x2x1
jax: 0.10.0
libtpu: 0.0.40
codegen_flags: <defaults>
</compile_context>

<pallas_src>
import sys

import jax
import jax.numpy as jnp
from jax import lax
from jax.experimental import pallas as pl
from jax.experimental.pallas import tpu as pltpu

EPS = sys.float_info.epsilon  # 2.220446049250313e-16, same as the PyTorch script
_LANE = 128
_SUBLANE = 8


def _round_up(v: int, m: int) -> int:
    return -(-v // m) * m


def _reference(x: jax.Array) -> jax.Array:
    """Pure-JAX reference mirroring the PyTorch forward (also the small-input path)."""
    num_head = x.shape[1]
    if num_head <= 1:
        return jnp.zeros((), dtype=jnp.float32)
    xf = x.astype(jnp.float32)
    var = jnp.var(xf, axis=1, ddof=1)  # unbiased, matches torch.var default
    return jnp.log(1.0 + num_head / (jnp.mean(var) + EPS))


def _make_kernel(num_head: int, batch: int, tb: int, tiles_per_core: int):
    inv_h = 1.0 / float(num_head)

    def kernel(x_ref, part_ref):
        c = pl.program_id(0)  # core-split axis ("parallel")
        i = pl.program_id(1)  # batch-tile axis ("arbitrary", reduction)

        @pl.when(i == 0)
        def _init():
            part_ref[...] = jnp.zeros_like(part_ref)

        # Global batch-tile index this step *owns* (unclamped: steps past the
        # real tile count own an empty row range and contribute nothing).
        t = c * tiles_per_core + i
        row0 = t * tb

        x = x_ref[...].astype(jnp.float32)  # (TB, H, D)

        # One-pass per-(b, d) variance over the head axis:
        #   ssd = sum_h x^2 - (sum_h x)^2 / H  == (H-1) * unbiased variance
        s1 = jnp.sum(x, axis=1)                       # (TB, D)
        s2 = jnp.sum(x * x, axis=1)                   # (TB, D)
        ssd = jnp.maximum(s2 - s1 * s1 * inv_h, 0.0)  # clamp: cancellation guard

        # Mask batch rows outside [0, B): the undefined pad tail of the last
        # real tile and fully-out-of-range steps whose index_map was clamped to
        # the last real tile.  where() guarantees garbage (possibly NaN/Inf)
        # never reaches the accumulator.
        rows = lax.broadcasted_iota(jnp.int32, ssd.shape, 0)
        ssd = jnp.where(rows + row0 < batch, ssd, 0.0)

        # Per-core running sum: the output block index is constant across the
        # "arbitrary" axis, so it stays resident in VMEM and acts as the
        # accumulator (no scratch needed; per-column intermediates are already
        # lane-dense in this layout, so the per-step reduce is negligible
        # next to the HBM DMA).
        part_ref[...] += jnp.sum(ssd)

    return kernel


def partition_loss(
    x: jax.Array,
    *,
    vmem_block_bytes: int = 12 * 1024 * 1024,
    min_kernel_elems: int = 1 << 20,
    core_splits: int = 2,
) -> jax.Array:
    """Pallas TPU implementation of PartitionLoss.forward.

    Args:
      x: (B, H, D) array; H is the head axis (PyTorch dim=1).
      vmem_block_bytes: per-input-buffer VMEM budget in bytes, *including*
        sublane/lane padding (double-buffered by the pipeline).
      min_kernel_elems: below this element count dispatch to the fused
        pure-JAX reduction (launch/DMA overhead dominates tiny inputs).
      core_splits: leading "parallel" grid size (2 uses both v7x TensorCores).
    Returns:
      scalar float32 loss.
    """
    B, H, D = x.shape
    if H <= 1:
        # PyTorch branch: loss = 0 when num_head == 1 (static shape decision).
        return jnp.zeros((), dtype=jnp.float32)

    if B * H * D < min_kernel_elems:
        return _reference(x)

    itemsize = jnp.dtype(x.dtype).itemsize
    sublane = _SUBLANE * max(1, 4 // itemsize)  # 8 f32 / 16 bf16 / 32 int8
    padded_row_bytes = _round_up(H, sublane) * _round_up(D, _LANE) * itemsize

    C = max(1, int(core_splits))
    # Tile the batch axis only; budget in padded bytes so enlarging tiles never
    # silently overshoots VMEM.
    tb = max(1, vmem_block_bytes // padded_row_bytes)
    tb = min(tb, pl.cdiv(B, C))
    nb = pl.cdiv(B, tb)    # number of real batch tiles
    tpc = pl.cdiv(nb, C)   # tiles per core ("arbitrary" axis length)

    def x_index_map(c, i):
        # Clamp so no step ever requests a fully out-of-bounds block; the
        # kernel's row mask (based on the unclamped index) zeroes duplicates.
        return (jnp.minimum(c * tpc + i, nb - 1), 0, 0)

    partial = pl.pallas_call(
        _make_kernel(H, B, tb, tpc),
        out_shape=jax.ShapeDtypeStruct((C, 1, 1), jnp.float32),
        grid_spec=pltpu.PrefetchScalarGridSpec(
            num_scalar_prefetch=0,
            grid=(C, tpc),
            in_specs=[pl.BlockSpec((tb, H, D), x_index_map)],
            out_specs=pl.BlockSpec((1, 1, 1), lambda c, i: (c, 0, 0)),
        ),
        compiler_params=pltpu.CompilerParams(
            dimension_semantics=("parallel", "arbitrary"),
            vmem_limit_bytes=48 * 1024 * 1024,
        ),
        cost_estimate=pl.CostEstimate(
            flops=4 * B * H * D + 2 * B * D,
            transcendentals=0,
            bytes_accessed=B * H * D * itemsize + C * 4,
        ),
    )(x)

    # Finalize on the host side of the call: sum the per-core partials, clamp,
    # normalize to the mean unbiased variance, then the single log.
    total_ssd = jnp.maximum(jnp.sum(partial), 0.0)
    var_mean = total_ssd / (float(H - 1) * float(B * D))
    return jnp.log(1.0 + H / (var_mean + EPS))


if __name__ == "__main__":
    key = jax.random.PRNGKey(0)
    ks = jax.random.split(key, 4)

    def check(x, **kw):
        out = partition_loss(x, **kw)
        jax.block_until_ready(out)
        ref = _reference(x)
        assert jnp.allclose(out, ref, rtol=1e-5, atol=1e-6), (out, ref)

    # 1) DAN-like small shape -> auto-dispatches to the fused pure-JAX path.
    x1 = jax.random.normal(ks[0], (8, 4, 32), dtype=jnp.float32)
    check(x1)

    # 2) Same shape, forced through the Pallas kernel (one tile per core).
    check(x1, min_kernel_elems=0)

    # 3) Ragged batch + non-128 feature dim + nonzero mean, tiny blocks ->
    #    multi-step accumulation, tail masking, clamped out-of-range step, and
    #    the ssd>=0 cancellation guard.
    x2 = jax.random.normal(ks[1], (33, 5, 130), dtype=jnp.float32) * 2.0 + 3.0
    check(x2, min_kernel_elems=0, vmem_block_bytes=4096)

    # 4) Moderate batch, default byte-budgeted tiles, both "cores" busy.
    x3 = jax.random.normal(ks[2], (64, 4, 512), dtype=jnp.float32)
    check(x3, min_kernel_elems=0)

    # 5) num_head == 1 -> loss is exactly 0.
    x4 = jax.random.normal(ks[3], (8, 1, 32), dtype=jnp.float32)
    assert partition_loss(x4) == 0.0

    print("KERNEL_OK")
</pallas_src>

<mosaic_0001>
module attributes {stable_mosaic.version = 11 : i64} {
  func.func @kernel(%arg0: i32, %arg1: i32, %arg2: memref<4x4x32xf32, #tpu.memory_space<vmem>>, %arg3: memref<1x1x1xf32, #tpu.memory_space<vmem>>) attributes {dimension_semantics = [#tpu.dimension_semantics<parallel>, #tpu.dimension_semantics<arbitrary>], iteration_bounds = array<i64: 2, 1>, scalar_prefetch = 0 : i64, scratch_operands = 0 : i64, tpu.core_type = #tpu.core_type<tc>, window_params = [{transform_indices = @transform_0, window_bounds = array<i64: 4, 4, 32>}, {transform_indices = @transform_1, window_bounds = array<i64: 1, 1, 1>}]} {
    %c0_i32 = arith.constant 0 : i32
    %0 = arith.cmpi eq, %arg1, %c0_i32 : i32
    %1 = arith.extui %0 : i1 to i32
    %c0_i32_0 = arith.constant 0 : i32
    %2 = arith.cmpi ne, %1, %c0_i32_0 : i32
    scf.if %2 {
      %cst_14 = arith.constant 0.000000e+00 : f32
      %31 = vector.broadcast %cst_14 : f32 to vector<1x1x1xf32>
      %c0_15 = arith.constant 0 : index
      %c0_16 = arith.constant 0 : index
      %c0_17 = arith.constant 0 : index
      %32 = vector.load %arg3[%c0_15, %c0_16, %c0_17] : memref<1x1x1xf32, #tpu.memory_space<vmem>>, vector<1x1x1xf32>
      tpu.vector_store %arg3[%c0_15, %c0_16, %c0_17], %31 {strides = array<i32>} : memref<1x1x1xf32, #tpu.memory_space<vmem>>, vector<1x1x1xf32>,
    } else {
    }
    %c1_i32 = arith.constant 1 : i32
    %3 = arith.muli %arg0, %c1_i32 : i32
    %4 = arith.addi %3, %arg1 : i32
    %c4_i32 = arith.constant 4 : i32
    %5 = arith.muli %4, %c4_i32 : i32
    %c0 = arith.constant 0 : index
    %c0_1 = arith.constant 0 : index
    %c0_2 = arith.constant 0 : index
    %6 = vector.load %arg2[%c0, %c0_1, %c0_2] : memref<4x4x32xf32, #tpu.memory_space<vmem>>, vector<4x4x32xf32>
    %cst = arith.constant dense<0.000000e+00> : vector<4x32xf32>
    %7 = vector.multi_reduction <add>, %6, %cst [1] : vector<4x4x32xf32> to vector<4x32xf32>
    %8 = arith.mulf %6, %6 : vector<4x4x32xf32>
    %cst_3 = arith.constant dense<0.000000e+00> : vector<4x32xf32>
    %9 = vector.multi_reduction <add>, %8, %cst_3 [1] : vector<4x4x32xf32> to vector<4x32xf32>
    %10 = arith.mulf %7, %7 : vector<4x32xf32>
    %cst_4 = arith.constant 2.500000e-01 : f32
    %11 = vector.broadcast %cst_4 : f32 to vector<4x32xf32>
    %12 = arith.mulf %10, %11 : vector<4x32xf32>
    %13 = arith.subf %9, %12 : vector<4x32xf32>
    %cst_5 = arith.constant 0.000000e+00 : f32
    %14 = vector.broadcast %cst_5 : f32 to vector<4x32xf32>
    %15 = arith.maximumf %13, %14 : vector<4x32xf32>
    %16 = tpu.iota {dimensions = array<i32: 0>} : vector<4x32xi32>
    %17 = vector.broadcast %5 : i32 to vector<4x32xi32>
    %18 = arith.addi %16, %17 : vector<4x32xi32>
    %c8_i32 = arith.constant 8 : i32
    %19 = vector.broadcast %c8_i32 : i32 to vector<4x32xi32>
    %20 = arith.cmpi slt, %18, %19 : vector<4x32xi32>
    %cst_6 = arith.constant 0.000000e+00 : f32
    %21 = vector.broadcast %cst_6 : f32 to vector<4x32xf32>
    %22 = arith.select %20, %15, %21 : vector<4x32xi1>, vector<4x32xf32>
    %c0_7 = arith.constant 0 : index
    %c0_8 = arith.constant 0 : index
    %c0_9 = arith.constant 0 : index
    %23 = vector.load %arg3[%c0_7, %c0_8, %c0_9] : memref<1x1x1xf32, #tpu.memory_space<vmem>>, vector<1x1x1xf32>
    %24 = vector.shape_cast %22 : vector<4x32xf32> to vector<1x4x32xf32>
    %cst_10 = arith.constant dense<0.000000e+00> : vector<1xf32>
    %25 = vector.multi_reduction <add>, %24, %cst_10 [1, 2] : vector<1x4x32xf32> to vector<1xf32>
    %26 = vector.shape_cast %25 : vector<1xf32> to vector<1x1x1xf32>
    %27 = vector.extract %26[0, 0, 0] : f32 from vector<1x1x1xf32>
    %28 = vector.broadcast %27 : f32 to vector<1x1x1xf32>
    %29 = arith.addf %23, %28 : vector<1x1x1xf32>
    %c0_11 = arith.constant 0 : index
    %c0_12 = arith.constant 0 : index
    %c0_13 = arith.constant 0 : index
    %30 = vector.load %arg3[%c0_11, %c0_12, %c0_13] : memref<1x1x1xf32, #tpu.memory_space<vmem>>, vector<1x1x1xf32>
    tpu.vector_store %arg3[%c0_11, %c0_12, %c0_13], %29 {strides = array<i32>} : memref<1x1x1xf32, #tpu.memory_space<vmem>>, vector<1x1x1xf32>,
    return
  }
  func.func @transform_0(%arg0: i32, %arg1: i32) -> (i32, i32, i32) {
    %c1_i32 = arith.constant 1 : i32
    %0 = arith.muli %arg0, %c1_i32 : i32
    %1 = arith.addi %0, %arg1 : i32
    %c1_i32_0 = arith.constant 1 : i32
    %2 = arith.minsi %1, %c1_i32_0 : i32
    %c0_i32 = arith.constant 0 : i32
    %c0_i32_1 = arith.constant 0 : i32
    %c0_i32_2 = arith.constant 0 : i32
    return %2, %c0_i32, %c0_i32_1 : i32, i32, i32
  }
  func.func @transform_1(%arg0: i32, %arg1: i32) -> (i32, i32, i32) {
    %c0_i32 = arith.constant 0 : i32
    %c0_i32_0 = arith.constant 0 : i32
    %c0_i32_1 = arith.constant 0 : i32
    return %arg0, %c0_i32, %c0_i32_0 : i32, i32, i32
  }
}

</mosaic_0001>

<bundles_post_ra>
// kernel: tpu_custom_call.1
= control target key start
LH: loop header
LB: loop body
LE: loop exit
PB: predicated region body
PF: predicated region fallthrough
CT: control target
= control target key end

     0   :  { %6 = vsyncpa [#allocation3], 0  ;;  %s652_s0 = inlined_call_operand.hbm [shape: f32[8,4,32], index: 0, kind: input, shape index: {}]   ;;  %s653_s1 = inlined_call_operand.vmem [shape: f32[2,1,1], index: 1, kind: output, shape index: {}]  }
   0x1   :  { %8 = vsyncpa [#allocation3 + $0x1], 0  ;;  %s515_s6 = smov 0   ;;  %s517_s7 = smov 0  }
   0x2   :  { %s519_s8 = smov 0   ;;  %s521_s9 = smov 0  }
   0x3   :  { %s523_s10 = smov 0   ;;  %s525_s11 = smov 0  }
   0x4 LB: > { %s346_s12 = sadd.s32 4294967295, %s499_s11   ;;  %s26_s13 = sadd.s32 1, %s495_s10  ;;  %s499_s11 = sphi %s525_s11, %s14_s11   ;;  %s495_s10 = sphi %s523_s10, %s660_s10   ;;  %s491_s9 = sphi %s521_s9, %s659_s9   ;;  %s487_s8 = sphi %s519_s8, %s658_s8   ;;  %s483_s7 = sphi %s517_s7, %s657_s7   ;;  %s479_s6 = sphi %s515_s6, %s656_s6  }
   0x5   : > { %p28_p0 = scmp.ge.s32.totalorder %s26_s13, 2  ;;  %p31_p1 = scmp.lt.s32.totalorder %s495_s10, 1 }
   0x6   : > { %s39_s14 = sadd.s32 1, %s487_s8  ;;  %p46_p2 = scmp.ne.s32.totalorder %s487_s8, %s483_s7 }
   0x7   : > { %s662_s13 = smov (%p28_p0, %s26_s13), 0  ;;  %p47_p4 = scmp.eq.s32.totalorder %s499_s11, 0 }
   0x8   : > { %s32_s15 = scalar_select %p31_p1, %s495_s10, 1 }
   0x9   : > { %p34_p3 = scmp.lt.s32.totalorder %s662_s13, 1  ;;  %p52_p5 = scmp.ne.s32.totalorder %s483_s7, %s479_s6 }
   0xa   : > { %p53_p6 = scmp.eq.s32.totalorder %s346_s12, 0  ;;  %p48_p7 = por %p47_p4, %p46_p2 }
   0xb   : > { %s35_s16 = scalar_select %p34_p3, %s662_s13, 1 }
   0xc   : > { %p556_p8 = por %p53_p6, %p52_p5  ;;  %p367_p10 = scmp.lt.s32.totalorder %s499_s11, 2 }
   0xd   : > { %s36_s18 = ssub.s32 %s32_s15, %s35_s16  ;;  %s102_s19 = sand.u32 1, %s487_s8  }
   0xe   : > { %p37_p9 = scmp.eq.s32.totalorder %s36_s18, 0  ;;  %s358_s20 = sshll.u32 %s32_s15, 8 }
   0xf   : > { %s350_s22 = sshll.u32 %s102_s19, 4  ;;  %s568_s25 = scalar_lea.hbm %s652_s0, %s358_s20 }
  0x10   : > { %s563_s21 = scalar_select %p37_p9, %s487_s8, %s39_s14  }
  0x11   : > { %s106_s26 = scalar_lea.vmem [#allocation2], %s350_s22  ;;  %p570_p11 = pnand %p367_p10, %p48_p7 }
  0x12   : > { %s116_s27 = sshll.u32 %s106_s26, 4  ;;  %s576_s29 = scalar_lea.sflag [#allocation3], %s102_s19  ;;  %s574_s27 = int_to_ptr.vmem [resolvable:$true] %s116_s27 }
  0x13   : > { %s419_s30 = scalar_lea.hbm %s568_s25, 256  ;;  %p421_p13 = pneg %p570_p11 }
  0x14   : > { %p420_p12 = scmp.ne.s32.totalorder %s568_s25, %s419_s30  ;;  %s424_s4 = scalar_lea.hbm %s652_s0, 512 }
  0x15   : > { %p425_p2 = scmp.lt.u32.totalorder %s568_s25, %s652_s0  ;;  %p426_p3 = scmp.lt.u32.totalorder %s424_s4, %s419_s30 }
  0x16   : > { %p422_p0 = pnand %p421_p13, %p420_p12  ;;  %p428_p5 = scmp.lt.u32.totalorder %s419_s30, %s568_s25 }
  0x17   : > { %p427_p4 = por %p426_p3, %p425_p2 }
  0x18   : > { %p423_p1 = pneg %p422_p0 }
  0x19   : > { %p429_p6 = por %p428_p5, %p427_p4 }
  0x1b   : > { %p430_p7 = pnand %p429_p6, %p423_p1 }
  0x1d   : > { %433 = shalt.err (!%p430_p7)
}
  0x1e   : > { %s434_s12 = scalar_lea.vmem %s574_s27, 256  ;;  %s501_s14 = smov [#allocation2]  }
  0x1f   : > { %p435_p9 = scmp.ne.s32.totalorder %s574_s27, %s434_s12  ;;  %s439_s15 = sshll.u32 %s501_s14, 4  ;;  %s440_s15 = int_to_ptr.vmem [resolvable:$false] %s439_s15 }
  0x20   : > { %s441_s16 = scalar_lea.vmem %s440_s15, 512  ;;  %p442_p0 = scmp.lt.s32.totalorder %s574_s27, %s440_s15 }
  0x21   : > { %p437_p10 = pnand %p435_p9, %p421_p13  ;;  %p443_p2 = scmp.lt.s32.totalorder %s441_s16, %s434_s12 }
  0x23   : > { %p438_p12 = pneg %p437_p10  ;;  %p444_p3 = por %p443_p2, %p442_p0 }
  0x25   : > { %p445_p4 = pnand %p444_p3, %p438_p12 }
  0x27   : > { %448 = shalt.err (!%p445_p4)
}
  0x28   : > { %s502_s18 = smov 64   ;;  %s503_s19 = smov 4  }
  0x29   : > { %366 = dma.hbm_to_vmem [thread:$0]  (!%p570_p11), %s568_s25, 256, %s574_s27, %s576_s29, %s502_s18, %s502_s18, %s503_s19  }
  0x2a   : > { %p353_p13 = scmp.ge.s32.totalorder %s499_s11, 1  ;;  %p124_p1 = scmp.lt.s32.totalorder %s499_s11, 3 }
  0x2c   : > { %p125_p5 = pnand %p353_p13, %p124_p1 }
  0x2d   : > { %s130_s20 = sand.u32 (!%p125_p5), 1, %s483_s7  }
  0x2e   : > { %128 = sbr.rel (%p125_p5) target bundleno = 291 (0x123), region = 24  ;;  %s354_s22 = sshll.u32 (!%p125_p5), %s130_s20, 4 }
  0x2f   : > { %s131_s23 = scalar_lea.sflag (!%p125_p5), [#allocation3], %s130_s20  ;;  %s134_s24 = scalar_lea.vmem (!%p125_p5), [#allocation2], %s354_s22 }
  0x35   : > { %474 = dma.done.wait (%p556_p8), %s131_s23, 256  }
  0x36   : > { %476 = vsyncadd (%p556_p8), %s131_s23, 4294967040  ;;  %v247_v0 = vlaneseq  ;;  %s355_s26 = sshll.u32 %s491_s9, 2  ;;  %vm170_vm0 = vcmask 257024   ;;  %v166_v2 = vld [vmem:[%s134_s24] sm:$0xf]  ;;  %vm256_vm1 = vcmask 1041409  }
  0x37   : > { %v167_v3 = vld [vmem:[%s134_s24 + $0x4] sm:$0xf]  ;;  %v168_v4 = vld [vmem:[%s134_s24 + $0x8] sm:$0xf]  ;;  %v614_v5 = vstv %s355_s26  ;;  %v169_v6 = vld [vmem:[%s134_s24 + $0xc] sm:$0xf]  ;;  %v199_v10 = vmul.f32 %v166_v2, %v166_v2 }
  0x38   : > { %v612_v1 = vshrl.u32 %v247_v0, 7  ;;  %v171_v7 = vsel %vm170_vm0, %v166_v2, 0.0  ;;  %v178_v8 = vsel %vm170_vm0, %v167_v3, 0.0  ;;  %v185_v9 = vsel %vm170_vm0, %v168_v4, 0.0  ;;  %p155_p8 = scmp.lt.s32.totalorder %s491_s9, 1 }
  0x39   : > { %v172_v11 = vrot.slane %v171_v7, 4  ;;  %v179_v12 = vrot.slane %v178_v8, 4  ;;  %v186_v13 = vrot.slane %v185_v9, 4  ;;  %v192_v14 = vsel %vm170_vm0, %v169_v6, 0.0 }
  0x3a   : > { %v193_v15 = vrot.slane %v192_v14, 4  ;;  %v200_v16 = vmul.f32 %v167_v3, %v167_v3  ;;  %v201_v17 = vmul.f32 %v168_v4, %v168_v4  ;;  %v202_v18 = vmul.f32 %v169_v6, %v169_v6  ;;  %s664_s9 = smov (!%p155_p8, %s491_s9), 1 }
  0x3b   : > { %v173_v19 = vadd.f32 %v172_v11, %v171_v7  ;;  %v180_v20 = vadd.f32 %v179_v12, %v178_v8  ;;  %v187_v21 = vadd.f32 %v186_v13, %v185_v9  ;;  %v203_v22 = vsel %vm170_vm0, %v199_v10, 0.0  ;;  %s157_s27 = scalar_lea.vmem %s653_s1, %s664_s9 }
  0x3c   : > { %v194_v23 = vadd.f32 %v193_v15, %v192_v14  ;;  %v204_v24 = vrot.slane %v203_v22, 4  ;;  %v210_v25 = vsel %vm170_vm0, %v200_v16, 0.0  ;;  %v217_v26 = vsel %vm170_vm0, %v201_v17, 0.0 }
  0x3d   : > { %v174_v27 = vrot.slane %v173_v19, 2  ;;  %v181_v28 = vrot.slane %v180_v20, 2  ;;  %v188_v29 = vrot.slane %v187_v21, 2  ;;  %v211_v30 = vrot.slane %v210_v25, 4 }
  0x3e   : > { %v195_v31 = vrot.slane %v194_v23, 2  ;;  %v205_v32 = vadd.f32 %v204_v24, %v203_v22  ;;  %v218_v33 = vrot.slane %v217_v26, 4  ;;  %v224_v34 = vsel %vm170_vm0, %v202_v18, 0.0 }
  0x3f   : > { %v175_v35 = vadd.f32 %v174_v27, %v173_v19  ;;  %v182_v36 = vadd.f32 %v181_v28, %v180_v20  ;;  %v189_v37 = vadd.f32 %v188_v29, %v187_v21  ;;  %v212_v38 = vadd.f32 %v211_v30, %v210_v25 }
  0x40   : > { %v196_v39 = vadd.f32 %v195_v31, %v194_v23  ;;  %v206_v40 = vrot.slane %v205_v32, 2  ;;  %v219_v41 = vadd.f32 %v218_v33, %v217_v26  ;;  %v225_v42 = vrot.slane %v224_v34, 4 }
  0x41   : > { %v176_v43 = vrot.slane %v175_v35, 1  ;;  %v183_v44 = vrot.slane %v182_v36, 1  ;;  %v190_v45 = vrot.slane %v189_v37, 1  ;;  %v213_v46 = vrot.slane %v212_v38, 2 }
  0x42   : > { %v197_v47 = vrot.slane %v196_v39, 1  ;;  %v207_v48 = vadd.f32 %v206_v40, %v205_v32  ;;  %v220_v49 = vrot.slane %v219_v41, 2  ;;  %v226_v50 = vadd.f32 %v225_v42, %v224_v34 }
  0x43   : > { %v177_v51 = vadd.f32 %v176_v43, %v175_v35  ;;  %v184_v52 = vadd.f32 %v183_v44, %v182_v36  ;;  %v191_v53 = vadd.f32 %v190_v45, %v189_v37  ;;  %v214_v54 = vadd.f32 %v213_v46, %v212_v38 }
  0x44   : > { %v198_v55 = vadd.f32 %v197_v47, %v196_v39  ;;  %v208_v56 = vrot.slane %v207_v48, 1  ;;  %v221_v57 = vadd.f32 %v220_v49, %v219_v41  ;;  %v227_v58 = vrot.slane %v226_v50, 2 }
  0x45   : > { %v215_v59 = vrot.slane %v214_v54, 1  ;;  %v231_v60 = vmul.f32 %v177_v51, %v177_v51  ;;  %v232_v61 = vmul.f32 %v184_v52, %v184_v52  ;;  %v233_v62 = vmul.f32 %v191_v53, %v191_v53 }
  0x46   : > { %v209_v63 = vadd.f32 %v208_v56, %v207_v48  ;;  %v222_v0 = vrot.slane %v221_v57, 1  ;;  %v228_v2 = vadd.f32 %v227_v58, %v226_v50  ;;  %v234_v3 = vmul.f32 %v198_v55, %v198_v55 }
  0x47   : > { %v216_v4 = vadd.f32 %v215_v59, %v214_v54  ;;  %v235_v6 = vmul.f32 0.25, %v231_v60  ;;  %v236_v7 = vmul.f32 0.25, %v232_v61  ;;  %v237_v8 = vmul.f32 0.25, %v233_v62 }
  0x48   : > { %v223_v9 = vadd.f32 %v222_v0, %v221_v57  ;;  %v229_v10 = vrot.slane %v228_v2, 1  ;;  %v238_v11 = vmul.f32 0.25, %v234_v3  ;;  %v250_v16 = vadd.s32 %v614_v5, %v612_v1 }
  0x49   : > { %v239_v12 = vsub.f32 %v209_v63, %v235_v6  ;;  %v240_v13 = vsub.f32 %v216_v4, %v236_v7  ;;  %vm258_vm2 = vcmask 1042434   ;;  %vm260_vm3 = vcmask 1043459  }
  0x4a   : > { %v230_v14 = vadd.f32 %v229_v10, %v228_v2  ;;  %v241_v15 = vsub.f32 %v223_v9, %v237_v8  ;;  %vm251_vm4 = vcmp.lt.s32.totalorder %v250_v16, 8  ;;  %vm162_vm5 = vcmask 0  }
  0x4b   : > { %v243_v17 = vmax.f32 %v239_v12, 0.0  ;;  %v244_v18 = vmax.f32 %v240_v13, 0.0  ;;  %v504_v1 = vmov 0.0  }
  0x4c   : > { %v242_v19 = vsub.f32 %v230_v14, %v238_v11  ;;  %v245_v20 = vmax.f32 %v241_v15, 0.0  ;;  %163 = vst.msk [vmem:[%s157_s27] sm:$0x1] %vm162_vm5, %v504_v1 }
  0x4d   : > { %v257_v21 = vsel %vm256_vm1, %v244_v18, %v243_v17 }
  0x4e   : > { %v246_v22 = vmax.f32 %v242_v19, 0.0  ;;  %v259_v23 = vsel %vm258_vm2, %v245_v20, %v257_v21 }
  0x50   : > { %v261_v24 = vsel %vm260_vm3, %v246_v22, %v259_v23 }
  0x51   : > { %v263_v25 = vsel %vm251_vm4, %v261_v24, 0.0 }
  0x52   : > { %v265_v26 = vsel %vm170_vm0, %v263_v25, 0.0 }
  0x53   : > { %266 = vadd.xlane.f32.xlu0 %v265_v26  ;;  %v264_v33 = vld [vmem:[%s157_s27] sm:$0x1] }
  0xe0   : > { %v267_v5 = vpop.xlane.xlu0 %266 }
  0xe1   : > { %v268_v27 = vrot.slane %v267_v5, 4 }
  0xe3   : > { %v269_v28 = vadd.f32 %v268_v27, %v267_v5 }
  0xe5   : > { %v270_v29 = vrot.slane %v269_v28, 2 }
  0xe7   : > { %v271_v30 = vadd.f32 %v270_v29, %v269_v28 }
  0xe9   : > { %v272_v31 = vrot.slane %v271_v30, 1 }
  0xeb   : > { %v273_v32 = vadd.f32 %v272_v31, %v271_v30 }
  0xed   : > { %359 = vpush %v273_v32 }
 0x11e   : > { %s360_s28 = spop %359 }
 0x11f   : > { %v275_v34 = vstv %s360_s28 }
 0x120   : > { %v276_v35 = vadd.f32 %v275_v34, %v264_v33 }
 0x122   : > { %278 = vst.msk [vmem:[%s157_s27] sm:$0x1] %vm162_vm5, %v276_v35 }
 0x123 PF: > { %s14_s11 = sadd.s32 1, %s499_s11   ;;  %s656_s6 = smov %s483_s7 }
 0x124   : > { %p11_p11 = scmp.ge.s32.totalorder %s14_s11, 4   ;;  %s657_s7 = smov %s487_s8 }
 0x125   : > { %s658_s8 = smov %s563_s21  ;;  %s659_s9 = smov %s495_s10 }
 0x126   : > { %s660_s10 = smov %s662_s13  ;;  %13 = sbr.rel (!%p11_p11) target bundleno = 4 (0x4), region = 68 }
 0x12d   :  { %296 = vsyncpa [#allocation3], 1 }
 0x12e   :  { %298 = vsyncpa [#allocation3 + $0x1], 1 }

</bundles_post_ra>
